<compile_context>
chip_gen: v5e
topology: v5e:2x2
jax: 0.10.0
libtpu: 0.0.40
codegen_flags: <defaults>
</compile_context>

<pallas_src>
import functools
import math

import jax
import jax.numpy as jnp
from jax import lax
from jax.experimental import pallas as pl
from jax.experimental.pallas import tpu as pltpu


def _round_up(x, m):
    return ((x + m - 1) // m) * m


def _leaky_relu_layernorm(z, gamma, beta, out_dim):
    """LeakyReLU(0.01) + LayerNorm over the first `out_dim` lanes of z (f32)."""
    y = jnp.where(z >= 0.0, z, 0.01 * z)
    inv_d = 1.0 / float(out_dim)
    if z.shape[-1] == out_dim:
        # No lane padding: skip the mask entirely (pure-VALU savings).
        mean = jnp.sum(y, axis=-1, keepdims=True) * inv_d
        centered = y - mean
    else:
        lane = lax.broadcasted_iota(jnp.int32, y.shape, dimension=1)
        mask = (lane < out_dim).astype(jnp.float32)
        y = y * mask
        mean = jnp.sum(y, axis=-1, keepdims=True) * inv_d
        centered = (y - mean) * mask
    var = jnp.sum(centered * centered, axis=-1, keepdims=True) * inv_d
    normed = centered * lax.rsqrt(var + 1e-5)
    return normed * gamma + beta


def _project_kernel(x_ref, w_ref, o_ref):
    # egoW = ego @ W  (row-tiled; W resident in VMEM); output may be bf16.
    o_ref[...] = jnp.dot(
        x_ref[...], w_ref[...], preferred_element_type=jnp.float32
    ).astype(o_ref.dtype)


def _agg_preprojected_kernel(a_ref, xk_ref, xm_ref, b_ref, g_ref, be_ref,
                             o_ref, *, out_dim):
    """Reordered path (out_dim <= in_dim): o = A @ egoW accumulated directly
    into the f32 output block; epilogue adds the egoW row tile + bias and
    applies LeakyReLU + LayerNorm."""
    k = pl.program_id(1)

    @pl.when(k == 0)
    def _():
        o_ref[...] = jnp.zeros_like(o_ref)

    o_ref[...] += jnp.dot(a_ref[...], xk_ref[...],
                          preferred_element_type=jnp.float32)

    @pl.when(k == pl.num_programs(1) - 1)
    def _():
        z = o_ref[...] + xm_ref[...].astype(jnp.float32) + b_ref[...]
        o_ref[...] = _leaky_relu_layernorm(z, g_ref[...], be_ref[...], out_dim)


def _agg_project_in_epilogue_kernel(a_ref, egok_ref, egom_ref, w_ref, b_ref,
                                    g_ref, be_ref, o_ref, acc_ref, *, out_dim):
    """Standard path (out_dim > in_dim): acc = A @ ego; epilogue applies W."""
    k = pl.program_id(1)

    @pl.when(k == 0)
    def _():
        acc_ref[...] = jnp.zeros_like(acc_ref)

    acc_ref[...] += jnp.dot(a_ref[...], egok_ref[...],
                            preferred_element_type=jnp.float32)

    @pl.when(k == pl.num_programs(1) - 1)
    def _():
        hi = acc_ref[...] + egom_ref[...].astype(jnp.float32)
        # Match W's storage dtype (bf16 in the fast path) for the MXU.
        z = jnp.dot(hi.astype(w_ref.dtype), w_ref[...],
                    preferred_element_type=jnp.float32) + b_ref[...]
        o_ref[...] = _leaky_relu_layernorm(z, g_ref[...], be_ref[...], out_dim)


def _agg_vmem_bytes(tm, tk, din_p, dout_p, s_bytes, standard_path):
    """Rough double-buffered VMEM footprint of the aggregation kernel."""
    b = 2 * tm * tk * s_bytes                      # A tiles
    if standard_path:
        b += 2 * tk * din_p * s_bytes              # ego K-slice
        b += 2 * tm * din_p * s_bytes              # ego row tile
        b += 2 * din_p * dout_p * s_bytes          # resident W
        b += tm * din_p * 4                        # f32 acc scratch
    else:
        b += 2 * tk * dout_p * s_bytes             # egoW K-slice
        b += 2 * tm * dout_p * s_bytes             # egoW row tile
    b += 2 * tm * dout_p * 4                       # f32 output tile
    b += 6 * dout_p * 4                            # bias / gamma / beta
    return b


def aggregator_gcn_forward(ego, a_dense, w_lin, b_lin, ln_gamma, ln_beta,
                           *, tm=512, tk=512, mxu_bf16=True,
                           vmem_limit_bytes=None):
    """ego: (N, in_dim) f32, a_dense: (N, N) f32, w_lin: (out_dim, in_dim) f32,
    b_lin/ln_gamma/ln_beta: (out_dim,) f32.  Returns (N, out_dim) f32."""
    n, in_dim = ego.shape
    out_dim = w_lin.shape[0]

    din_p = _round_up(in_dim, 128)     # lane-dense feature dims
    dout_p = _round_up(out_dim, 128)

    # Cap tiles for small graphs so N is not padded to a huge lcm(tm, tk);
    # also keeps more row tiles in flight for megacore sharding.
    cap = max(256, _round_up(n, 256))
    tm = min(tm, cap)
    tk = min(tk, cap)
    n_pad = _round_up(n, math.lcm(tm, tk))   # grid divides evenly

    stream_dtype = jnp.bfloat16 if mxu_bf16 else jnp.float32
    s_bytes = jnp.dtype(stream_dtype).itemsize
    standard_path = out_dim > in_dim

    if vmem_limit_bytes is None:
        need = _agg_vmem_bytes(tm, tk, din_p, dout_p, s_bytes, standard_path)
        vmem_limit_bytes = min(max(2 * need, 32 * 1024 * 1024),
                               64 * 1024 * 1024)   # stays legal on v7x

    # --- HBM-side preparation. Cast BEFORE padding (moves bf16, not f32) and
    # skip the pad entirely when shapes already divide the tiles.
    a_p = a_dense.astype(stream_dtype)
    if n_pad != n:
        a_p = jnp.pad(a_p, ((0, n_pad - n), (0, n_pad - n)))

    b_p = jnp.pad(b_lin.astype(jnp.float32), (0, dout_p - out_dim)).reshape(1, dout_p)
    g_p = jnp.pad(ln_gamma.astype(jnp.float32), (0, dout_p - out_dim)).reshape(1, dout_p)
    be_p = jnp.pad(ln_beta.astype(jnp.float32), (0, dout_p - out_dim)).reshape(1, dout_p)

    grid = (n_pad // tm, n_pad // tk)
    vec_spec = pl.BlockSpec((1, dout_p), lambda i, k: (0, 0))
    cparams = pltpu.CompilerParams(
        dimension_semantics=("parallel", "arbitrary"),
        vmem_limit_bytes=vmem_limit_bytes)

    if not standard_path:
        # --- Reordered path: project once (f32 inputs, stream-dtype output),
        #     then aggregate the projected features:
        #     (I + A) @ (ego @ W) == (ego + A @ ego) @ W
        ego_f32 = ego.astype(jnp.float32)
        if n_pad != n or din_p != in_dim:
            ego_f32 = jnp.pad(ego_f32, ((0, n_pad - n), (0, din_p - in_dim)))
        w_f32 = jnp.transpose(w_lin).astype(jnp.float32)
        if din_p != in_dim or dout_p != out_dim:
            w_f32 = jnp.pad(w_f32, ((0, din_p - in_dim), (0, dout_p - out_dim)))

        egow = pl.pallas_call(
            _project_kernel,
            out_shape=jax.ShapeDtypeStruct((n_pad, dout_p), stream_dtype),
            grid_spec=pltpu.PrefetchScalarGridSpec(
                num_scalar_prefetch=0,
                grid=(n_pad // tm,),
                in_specs=[
                    pl.BlockSpec((tm, din_p), lambda i: (i, 0)),
                    pl.BlockSpec((din_p, dout_p), lambda i: (0, 0)),
                ],
                out_specs=pl.BlockSpec((tm, dout_p), lambda i: (i, 0)),
            ),
            compiler_params=pltpu.CompilerParams(
                dimension_semantics=("parallel",),
                vmem_limit_bytes=vmem_limit_bytes),
        )(ego_f32, w_f32)

        kernel = functools.partial(_agg_preprojected_kernel, out_dim=out_dim)
        out_p = pl.pallas_call(
            kernel,
            out_shape=jax.ShapeDtypeStruct((n_pad, dout_p), jnp.float32),
            grid_spec=pltpu.PrefetchScalarGridSpec(
                num_scalar_prefetch=0,
                grid=grid,
                in_specs=[
                    pl.BlockSpec((tm, tk), lambda i, k: (i, k)),       # A tile
                    pl.BlockSpec((tk, dout_p), lambda i, k: (k, 0)),   # egoW K-slice
                    pl.BlockSpec((tm, dout_p), lambda i, k: (i, 0)),   # egoW row tile
                    vec_spec, vec_spec, vec_spec,                      # bias, gamma, beta
                ],
                out_specs=pl.BlockSpec((tm, dout_p), lambda i, k: (i, 0)),
            ),
            compiler_params=cparams,
        )(a_p, egow, egow, b_p, g_p, be_p)
    else:
        # --- Standard path: stream ego through the A reduction, project in epilogue.
        ego_s = ego.astype(stream_dtype)
        if n_pad != n or din_p != in_dim:
            ego_s = jnp.pad(ego_s, ((0, n_pad - n), (0, din_p - in_dim)))
        w_s = jnp.transpose(w_lin).astype(stream_dtype)
        if din_p != in_dim or dout_p != out_dim:
            w_s = jnp.pad(w_s, ((0, din_p - in_dim), (0, dout_p - out_dim)))

        kernel = functools.partial(_agg_project_in_epilogue_kernel, out_dim=out_dim)
        out_p = pl.pallas_call(
            kernel,
            out_shape=jax.ShapeDtypeStruct((n_pad, dout_p), jnp.float32),
            grid_spec=pltpu.PrefetchScalarGridSpec(
                num_scalar_prefetch=0,
                grid=grid,
                in_specs=[
                    pl.BlockSpec((tm, tk), lambda i, k: (i, k)),        # A tile
                    pl.BlockSpec((tk, din_p), lambda i, k: (k, 0)),     # ego K-slice
                    pl.BlockSpec((tm, din_p), lambda i, k: (i, 0)),     # ego row tile
                    pl.BlockSpec((din_p, dout_p), lambda i, k: (0, 0)), # W (resident)
                    vec_spec, vec_spec, vec_spec,                       # bias, gamma, beta
                ],
                out_specs=pl.BlockSpec((tm, dout_p), lambda i, k: (i, 0)),
                scratch_shapes=[pltpu.VMEM((tm, din_p), jnp.float32)],
            ),
            compiler_params=cparams,
        )(a_p, ego_s, ego_s, w_s, b_p, g_p, be_p)

    return out_p[:n, :out_dim]


def reference_forward(ego, a_dense, w_lin, b_lin, ln_gamma, ln_beta):
    side = a_dense @ ego
    hi = ego + side
    z = hi @ w_lin.T + b_lin
    y = jnp.where(z >= 0, z, 0.01 * z)
    mean = jnp.mean(y, axis=-1, keepdims=True)
    var = jnp.mean((y - mean) ** 2, axis=-1, keepdims=True)
    return (y - mean) / jnp.sqrt(var + 1e-5) * ln_gamma + ln_beta


def _make_inputs(key, n_nodes, in_dim, out_dim):
    k_ego, k_a, k_w, k_b, k_g, k_be = jax.random.split(key, 6)
    ego = jax.random.normal(k_ego, (n_nodes, in_dim), dtype=jnp.float32)
    a_dense = jax.random.uniform(k_a, (n_nodes, n_nodes), dtype=jnp.float32) / n_nodes
    xav = math.sqrt(6.0 / (in_dim + out_dim))
    w_lin = jax.random.uniform(k_w, (out_dim, in_dim), dtype=jnp.float32,
                               minval=-xav, maxval=xav)
    b_lin = 0.1 * jax.random.normal(k_b, (out_dim,), dtype=jnp.float32)
    ln_gamma = 1.0 + 0.1 * jax.random.normal(k_g, (out_dim,), dtype=jnp.float32)
    ln_beta = 0.1 * jax.random.normal(k_be, (out_dim,), dtype=jnp.float32)
    return ego, a_dense, w_lin, b_lin, ln_gamma, ln_beta


if __name__ == "__main__":
    key = jax.random.PRNGKey(0)
    k1, k2 = jax.random.split(key, 2)

    # --- Test 1: reordered path (out_dim <= in_dim), bf16 streaming (default).
    args1 = _make_inputs(k1, 16, 32, 32)
    out_bf16 = jax.block_until_ready(aggregator_gcn_forward(*args1))
    ref1 = reference_forward(*args1)
    assert out_bf16.shape == (16, 32)
    assert jnp.allclose(out_bf16, ref1, atol=5e-2, rtol=5e-2)

    # --- Test 2: same path, strict f32 streaming for tight numerics.
    out_f32 = jax.block_until_ready(
        aggregator_gcn_forward(*args1, mxu_bf16=False))
    assert jnp.allclose(out_f32, ref1, atol=1e-4, rtol=1e-4)

    # --- Test 3: standard path (out_dim > in_dim, padded LayerNorm lanes), bf16.
    args2 = _make_inputs(k2, 20, 16, 48)
    out2 = jax.block_until_ready(aggregator_gcn_forward(*args2))
    ref2 = reference_forward(*args2)
    assert out2.shape == (20, 48)
    assert jnp.allclose(out2, ref2, atol=5e-2, rtol=5e-2)

    print("KERNEL_OK")
</pallas_src>

<mosaic_0001>
module attributes {stable_mosaic.version = 11 : i64} {
  func.func @_project_kernel(%arg0: i32, %arg1: memref<256x128xf32, #tpu.memory_space<vmem>>, %arg2: memref<128x128xf32, #tpu.memory_space<vmem>>, %arg3: memref<256x128xbf16, #tpu.memory_space<vmem>>) attributes {dimension_semantics = [#tpu.dimension_semantics<parallel>], iteration_bounds = array<i64: 1>, scalar_prefetch = 0 : i64, scratch_operands = 0 : i64, tpu.core_type = #tpu.core_type<tc>, window_params = [{transform_indices = @transform_0, window_bounds = array<i64: 256, 128>}, {pipeline_mode = #tpu.pipeline_mode<synchronous>, transform_indices = @transform_1, window_bounds = array<i64: 128, 128>}, {transform_indices = @transform_2, window_bounds = array<i64: 256, 128>}]} {
    %c0 = arith.constant 0 : index
    %c0_0 = arith.constant 0 : index
    %0 = vector.load %arg1[%c0, %c0_0] : memref<256x128xf32, #tpu.memory_space<vmem>>, vector<256x128xf32>
    %c0_1 = arith.constant 0 : index
    %c0_2 = arith.constant 0 : index
    %1 = vector.load %arg2[%c0_1, %c0_2] : memref<128x128xf32, #tpu.memory_space<vmem>>, vector<128x128xf32>
    %cst = arith.constant dense<0.000000e+00> : vector<256x128xf32>
    %2 = tpu.matmul %0, %1, %cst {dimension_numbers = #tpu.dot_dimension_numbers<[1], [0], [0], [1], [0, 0, 1, 1], [], []>} : vector<256x128xf32>, vector<128x128xf32>, vector<256x128xf32> -> vector<256x128xf32>
    %3 = arith.truncf %2 : vector<256x128xf32> to vector<256x128xbf16>
    %c0_3 = arith.constant 0 : index
    %c0_4 = arith.constant 0 : index
    %4 = vector.load %arg3[%c0_3, %c0_4] : memref<256x128xbf16, #tpu.memory_space<vmem>>, vector<256x128xbf16>
    tpu.vector_store %arg3[%c0_3, %c0_4], %3 {strides = array<i32>} : memref<256x128xbf16, #tpu.memory_space<vmem>>, vector<256x128xbf16>,
    return
  }
  func.func @transform_0(%arg0: i32) -> (i32, i32) {
    %c0_i32 = arith.constant 0 : i32
    %c0_i32_0 = arith.constant 0 : i32
    return %arg0, %c0_i32 : i32, i32
  }
  func.func @transform_1(%arg0: i32) -> (i32, i32) {
    %c0_i32 = arith.constant 0 : i32
    %c0_i32_0 = arith.constant 0 : i32
    %c0_i32_1 = arith.constant 0 : i32
    return %c0_i32, %c0_i32_0 : i32, i32
  }
  func.func @transform_2(%arg0: i32) -> (i32, i32) {
    %c0_i32 = arith.constant 0 : i32
    %c0_i32_0 = arith.constant 0 : i32
    return %arg0, %c0_i32 : i32, i32
  }
}

</mosaic_0001>

<bundles_post_ra>
// kernel: tpu_custom_call.1
= control target key start
LH: loop header
LB: loop body
LE: loop exit
PB: predicated region body
PF: predicated region fallthrough
CT: control target
= control target key end

     0   :  { %7 = vsyncpa [#allocation3], 0  ;;  %s548_s0 = inlined_call_operand.hbm [shape: f32[256,128], index: 0, kind: input, shape index: {}]   ;;  %s549_s1 = inlined_call_operand.hbm [shape: f32[128,128], index: 1, kind: input, shape index: {}]   ;;  %s550_s2 = inlined_call_operand.hbm [shape: bf16[256,128], index: 2, kind: output, shape index: {}]  }
   0x1   :  { %8 = vsyncpa [#allocation6], 0 }
   0x2   :  { %9 = vsyncpa [#allocation4], 0  ;;  %s14_s11 = sshll.u32 %s548_s0, 4  ;;  %s517_s12 = smov [#allocation2]   ;;  %s15_s11 = int_to_ptr.hbm [resolvable:$true] %s14_s11 }
   0x3   :  { %s16_s13 = sshll.u32 %s517_s12, 4  ;;  %s27_s16 = sshll.u32 %s549_s1, 4  ;;  %s17_s13 = int_to_ptr.vmem [resolvable:$true] %s16_s13  ;;  %s28_s16 = int_to_ptr.hbm [resolvable:$true] %s27_s16 }
   0x4   :  { %s518_s17 = smov 128   ;;  %s519_s18 = smov 8  }
   0x5   :  { %22 = dma.hbm_to_vmem [thread:$0]  %s15_s11, 4096, %s17_s13, [#allocation3], %s518_s17, %s518_s17, %s519_s18  }
   0x6   :  { %s520_s19 = smov [#allocation5]  }
   0x7   :  { %s29_s20 = sshll.u32 %s520_s19, 4  ;;  %s30_s20 = int_to_ptr.vmem [resolvable:$true] %s29_s20 }
   0x8   :  { %35 = dma.hbm_to_vmem [thread:$0]  %s28_s16, 2048, %s30_s20, [#allocation6], %s518_s17, %s518_s17, %s519_s18  }
   0x9   :  { %511 = dma.done.wait [#allocation3], 4096  }
   0xa   :  { %512 = vsyncadd [#allocation3], 4294963200 }
   0xb   :  { %513 = dma.done.wait [#allocation6], 2048  }
   0xc   :  { %514 = vsyncadd [#allocation6], 4294965248  ;;  %v91_v0 = vld [vmem:[#allocation5 + $0x78] sm:$0xff]  ;;  %v90_v1 = vld [vmem:[#allocation5 + $0x70] sm:$0xff]  ;;  %s521_s0 = smov [#allocation7]   ;;  %s275_s23 = sshll.u32 %s550_s2, 4  ;;  %s276_s23 = int_to_ptr.hbm [resolvable:$true] %s275_s23 }
   0xd   :  { %92 = vmatpush.msra.mxu0 %v91_v0  ;;  %384 = vmatpush.msra.mxu1 %v91_v0  ;;  %v89_v2 = vld [vmem:[#allocation5 + $0x68] sm:$0xff]  ;;  %v88_v3 = vld [vmem:[#allocation5 + $0x60] sm:$0xff]  ;;  %v87_v4 = vld [vmem:[#allocation5 + $0x58] sm:$0xff]  ;;  %s273_s1 = sshll.u32 %s521_s0, 4  ;;  %s522_s24 = smov 64   ;;  %s274_s1 = int_to_ptr.vmem [resolvable:$true] %s273_s1 }
   0xe   :  { %385 = vmatpush.msra.mxu2 %v91_v0  ;;  %386 = vmatpush.msra.mxu3 %v91_v0  ;;  %v86_v5 = vld [vmem:[#allocation5 + $0x50] sm:$0xff]  ;;  %v85_v6 = vld [vmem:[#allocation5 + $0x48] sm:$0xff]  ;;  %v84_v7 = vld [vmem:[#allocation5 + $0x40] sm:$0xff]  ;;  %s523_s25 = smov 4  }
   0xf   :  { %93 = vmatpush.msra.mxu0 %v90_v1  ;;  %387 = vmatpush.msra.mxu1 %v90_v1  ;;  %v83_v8 = vld [vmem:[#allocation5 + $0x38] sm:$0xff]  ;;  %v82_v9 = vld [vmem:[#allocation5 + $0x30] sm:$0xff]  ;;  %v81_v10 = vld [vmem:[#allocation5 + $0x28] sm:$0xff] }
  0x10   :  { %388 = vmatpush.msra.mxu2 %v90_v1  ;;  %389 = vmatpush.msra.mxu3 %v90_v1  ;;  %v80_v11 = vld [vmem:[#allocation5 + $0x20] sm:$0xff]  ;;  %v79_v12 = vld [vmem:[#allocation5 + $0x18] sm:$0xff]  ;;  %v78_v13 = vld [vmem:[#allocation5 + $0x10] sm:$0xff] }
  0x11   :  { %94 = vmatpush.msra.mxu0 %v89_v2  ;;  %390 = vmatpush.msra.mxu1 %v89_v2  ;;  %v77_v14 = vld [vmem:[#allocation5 + $0x8] sm:$0xff]  ;;  %v76_v15 = vld [vmem:[#allocation5] sm:$0xff]  ;;  %v46_v24 = vld [vmem:[#allocation2 + $0x10] sm:$0xff] }
  0x12   :  { %391 = vmatpush.msra.mxu2 %v89_v2  ;;  %392 = vmatpush.msra.mxu3 %v89_v2  ;;  %v44_v16 = vld [vmem:[#allocation2] sm:$0xff]  ;;  %v45_v20 = vld [vmem:[#allocation2 + $0x8] sm:$0xff]  ;;  %v54_v25 = vld [vmem:[#allocation2 + $0x50] sm:$0xff] }
  0x13   :  { %95 = vmatpush.msra.mxu0 %v88_v3  ;;  %393 = vmatpush.msra.mxu1 %v88_v3  ;;  %v52_v17 = vld [vmem:[#allocation2 + $0x40] sm:$0xff]  ;;  %v53_v21 = vld [vmem:[#allocation2 + $0x48] sm:$0xff]  ;;  %v62_v26 = vld [vmem:[#allocation2 + $0x90] sm:$0xff] }
  0x14   :  { %394 = vmatpush.msra.mxu2 %v88_v3  ;;  %395 = vmatpush.msra.mxu3 %v88_v3  ;;  %v60_v18 = vld [vmem:[#allocation2 + $0x80] sm:$0xff]  ;;  %v61_v22 = vld [vmem:[#allocation2 + $0x88] sm:$0xff]  ;;  %v70_v27 = vld [vmem:[#allocation2 + $0xd0] sm:$0xff] }
  0x15   :  { %96 = vmatpush.msra.mxu0 %v87_v4  ;;  %396 = vmatpush.msra.mxu1 %v87_v4  ;;  %v68_v19 = vld [vmem:[#allocation2 + $0xc0] sm:$0xff]  ;;  %v69_v23 = vld [vmem:[#allocation2 + $0xc8] sm:$0xff]  ;;  %v47_v28 = vld [vmem:[#allocation2 + $0x18] sm:$0xff] }
  0x16   :  { %397 = vmatpush.msra.mxu2 %v87_v4  ;;  %398 = vmatpush.msra.mxu3 %v87_v4  ;;  %v55_v29 = vld [vmem:[#allocation2 + $0x58] sm:$0xff]  ;;  %v48_v32 = vld [vmem:[#allocation2 + $0x20] sm:$0xff]  ;;  %v49_v36 = vld [vmem:[#allocation2 + $0x28] sm:$0xff] }
  0x17   :  { %97 = vmatpush.msra.mxu0 %v86_v5  ;;  %399 = vmatpush.msra.mxu1 %v86_v5  ;;  %v63_v30 = vld [vmem:[#allocation2 + $0x98] sm:$0xff]  ;;  %v56_v33 = vld [vmem:[#allocation2 + $0x60] sm:$0xff]  ;;  %v57_v37 = vld [vmem:[#allocation2 + $0x68] sm:$0xff] }
  0x18   :  { %400 = vmatpush.msra.mxu2 %v86_v5  ;;  %401 = vmatpush.msra.mxu3 %v86_v5  ;;  %v71_v31 = vld [vmem:[#allocation2 + $0xd8] sm:$0xff]  ;;  %v64_v34 = vld [vmem:[#allocation2 + $0xa0] sm:$0xff]  ;;  %v65_v38 = vld [vmem:[#allocation2 + $0xa8] sm:$0xff] }
  0x19   :  { %98 = vmatpush.msra.mxu0 %v85_v6  ;;  %402 = vmatpush.msra.mxu1 %v85_v6  ;;  %v72_v35 = vld [vmem:[#allocation2 + $0xe0] sm:$0xff]  ;;  %v73_v39 = vld [vmem:[#allocation2 + $0xe8] sm:$0xff]  ;;  %v50_v40 = vld [vmem:[#allocation2 + $0x30] sm:$0xff] }
  0x1a   :  { %403 = vmatpush.msra.mxu2 %v85_v6  ;;  %404 = vmatpush.msra.mxu3 %v85_v6  ;;  %v58_v41 = vld [vmem:[#allocation2 + $0x70] sm:$0xff]  ;;  %v51_v44 = vld [vmem:[#allocation2 + $0x38] sm:$0xff] }
  0x1b   :  { %99 = vmatpush.msra.mxu0 %v84_v7  ;;  %405 = vmatpush.msra.mxu1 %v84_v7  ;;  %v66_v42 = vld [vmem:[#allocation2 + $0xb0] sm:$0xff]  ;;  %v59_v45 = vld [vmem:[#allocation2 + $0x78] sm:$0xff] }
  0x1c   :  { %406 = vmatpush.msra.mxu2 %v84_v7  ;;  %407 = vmatpush.msra.mxu3 %v84_v7  ;;  %v74_v43 = vld [vmem:[#allocation2 + $0xf0] sm:$0xff]  ;;  %v67_v46 = vld [vmem:[#allocation2 + $0xb8] sm:$0xff] }
  0x1d   :  { %100 = vmatpush.msra.mxu0 %v83_v8  ;;  %408 = vmatpush.msra.mxu1 %v83_v8  ;;  %v75_v47 = vld [vmem:[#allocation2 + $0xf8] sm:$0xff] }
  0x1e   :  { %409 = vmatpush.msra.mxu2 %v83_v8  ;;  %410 = vmatpush.msra.mxu3 %v83_v8 }
  0x1f   :  { %101 = vmatpush.msra.mxu0 %v82_v9  ;;  %411 = vmatpush.msra.mxu1 %v82_v9 }
  0x20   :  { %412 = vmatpush.msra.mxu2 %v82_v9  ;;  %413 = vmatpush.msra.mxu3 %v82_v9 }
  0x21   :  { %102 = vmatpush.msra.mxu0 %v81_v10  ;;  %414 = vmatpush.msra.mxu1 %v81_v10 }
  0x22   :  { %415 = vmatpush.msra.mxu2 %v81_v10  ;;  %416 = vmatpush.msra.mxu3 %v81_v10 }
  0x23   :  { %103 = vmatpush.msra.mxu0 %v80_v11  ;;  %417 = vmatpush.msra.mxu1 %v80_v11 }
  0x24   :  { %418 = vmatpush.msra.mxu2 %v80_v11  ;;  %419 = vmatpush.msra.mxu3 %v80_v11 }
  0x25   :  { %104 = vmatpush.msra.mxu0 %v79_v12  ;;  %420 = vmatpush.msra.mxu1 %v79_v12 }
  0x26   :  { %421 = vmatpush.msra.mxu2 %v79_v12  ;;  %422 = vmatpush.msra.mxu3 %v79_v12 }
  0x27   :  { %105 = vmatpush.msra.mxu0 %v78_v13  ;;  %423 = vmatpush.msra.mxu1 %v78_v13 }
  0x28   :  { %424 = vmatpush.msra.mxu2 %v78_v13  ;;  %425 = vmatpush.msra.mxu3 %v78_v13 }
  0x29   :  { %106 = vmatpush.msra.mxu0 %v77_v14  ;;  %426 = vmatpush.msra.mxu1 %v77_v14 }
  0x2a   :  { %427 = vmatpush.msra.mxu2 %v77_v14  ;;  %428 = vmatpush.msra.mxu3 %v77_v14 }
  0x2b   :  { %107 = vmatpush.msra.mxu0 %v76_v15  ;;  %429 = vmatpush.msra.mxu1 %v76_v15 }
  0x2c   :  { %430 = vmatpush.msra.mxu2 %v76_v15  ;;  %431 = vmatpush.msra.mxu3 %v76_v15 }
  0x2d   :  { %108 = vmatmul.f32.vlgmr.msra.gmra.mxu0 %v44_v16  ;;  %132 = vmatmul.f32.vlgmr.msra.gmra.mxu1 %v52_v17 }
  0x2e   :  { %156 = vmatmul.f32.vlgmr.msra.gmra.mxu2 %v60_v18  ;;  %180 = vmatmul.f32.vlgmr.msra.gmra.mxu3 %v68_v19 }
  0x35   :  { %111 = vmatmul.f32.gmra.mxu0 %v45_v20  ;;  %135 = vmatmul.f32.gmra.mxu1 %v53_v21 }
  0x36   :  { %159 = vmatmul.f32.gmra.mxu2 %v61_v22  ;;  %183 = vmatmul.f32.gmra.mxu3 %v69_v23 }
  0x3d   :  { %114 = vmatmul.f32.gmra.mxu0 %v46_v24  ;;  %138 = vmatmul.f32.gmra.mxu1 %v54_v25 }
  0x3e   :  { %162 = vmatmul.f32.gmra.mxu2 %v62_v26  ;;  %186 = vmatmul.f32.gmra.mxu3 %v70_v27 }
  0x45   :  { %117 = vmatmul.f32.gmra.mxu0 %v47_v28  ;;  %141 = vmatmul.f32.gmra.mxu1 %v55_v29 }
  0x46   :  { %165 = vmatmul.f32.gmra.mxu2 %v63_v30  ;;  %189 = vmatmul.f32.gmra.mxu3 %v71_v31 }
  0x4d   :  { %120 = vmatmul.f32.gmra.mxu0 %v48_v32  ;;  %144 = vmatmul.f32.gmra.mxu1 %v56_v33 }
  0x4e   :  { %168 = vmatmul.f32.gmra.mxu2 %v64_v34  ;;  %192 = vmatmul.f32.gmra.mxu3 %v72_v35 }
  0x55   :  { %123 = vmatmul.f32.gmra.mxu0 %v49_v36  ;;  %147 = vmatmul.f32.gmra.mxu1 %v57_v37 }
  0x56   :  { %171 = vmatmul.f32.gmra.mxu2 %v65_v38  ;;  %195 = vmatmul.f32.gmra.mxu3 %v73_v39 }
  0x5d   :  { %126 = vmatmul.f32.gmra.mxu0 %v50_v40  ;;  %150 = vmatmul.f32.gmra.mxu1 %v58_v41 }
  0x5e   :  { %174 = vmatmul.f32.gmra.mxu2 %v66_v42  ;;  %198 = vmatmul.f32.gmra.mxu3 %v74_v43 }
  0x65   :  { %129 = vmatmul.f32.gmra.mxu0 %v51_v44  ;;  %153 = vmatmul.f32.gmra.mxu1 %v59_v45 }
  0x66   :  { %177 = vmatmul.f32.gmra.mxu2 %v67_v46  ;;  %201 = vmatmul.f32.gmra.mxu3 %v75_v47 }
  0xaa   :  { %v109_v48 = vpop.f32.mrf.mxu0  ;;  %v133_v49 = vpop.f32.mrf.mxu1 }
  0xb1   :  { %v157_v50 = vpop.f32.mrf.mxu2  ;;  %v181_v51 = vpop.f32.mrf.mxu3 }
  0xb2   :  { %v112_v52 = vpop.f32.mrf.mxu0  ;;  %v136_v53 = vpop.f32.mrf.mxu1 }
  0xb3   :  { %v292_v54 = vpack.c.bf16 %v112_v52, %v109_v48  ;;  %v312_v55 = vpack.c.bf16 %v136_v53, %v133_v49 }
  0xb5   :  { %293 = vst [vmem:[#allocation7] sm:$0xff] %v292_v54  }
  0xb6   :  { %372 = vst [vmem:[#allocation7 + $0x20] sm:$0xff] %v312_v55  }
  0xb9   :  { %v160_v56 = vpop.f32.mrf.mxu2  ;;  %v184_v57 = vpop.f32.mrf.mxu3 }
  0xba   :  { %v332_v58 = vpack.c.bf16 %v160_v56, %v157_v50  ;;  %v352_v59 = vpack.c.bf16 %v184_v57, %v181_v51  ;;  %v115_v60 = vpop.f32.mrf.mxu0  ;;  %v139_v61 = vpop.f32.mrf.mxu1 }
  0xbc   :  { %376 = vst [vmem:[#allocation7 + $0x40] sm:$0xff] %v332_v58  }
  0xbd   :  { %380 = vst [vmem:[#allocation7 + $0x60] sm:$0xff] %v352_v59  }
  0xc1   :  { %v163_v62 = vpop.f32.mrf.mxu2  ;;  %v187_v63 = vpop.f32.mrf.mxu3 }
  0xc2   :  { %v118_v0 = vpop.f32.mrf.mxu0  ;;  %v142_v1 = vpop.f32.mrf.mxu1 }
  0xc3   :  { %v297_v2 = vpack.c.bf16 %v118_v0, %v115_v60  ;;  %v317_v3 = vpack.c.bf16 %v142_v1, %v139_v61 }
  0xc5   :  { %369 = vst [vmem:[#allocation7 + $0x8] sm:$0xff] %v297_v2  }
  0xc6   :  { %373 = vst [vmem:[#allocation7 + $0x28] sm:$0xff] %v317_v3  }
  0xc9   :  { %v166_v4 = vpop.f32.mrf.mxu2  ;;  %v190_v5 = vpop.f32.mrf.mxu3 }
  0xca   :  { %v337_v6 = vpack.c.bf16 %v166_v4, %v163_v62  ;;  %v357_v7 = vpack.c.bf16 %v190_v5, %v187_v63  ;;  %v121_v8 = vpop.f32.mrf.mxu0  ;;  %v145_v9 = vpop.f32.mrf.mxu1 }
  0xcc   :  { %377 = vst [vmem:[#allocation7 + $0x48] sm:$0xff] %v337_v6  }
  0xcd   :  { %381 = vst [vmem:[#allocation7 + $0x68] sm:$0xff] %v357_v7  }
  0xd1   :  { %v169_v10 = vpop.f32.mrf.mxu2  ;;  %v193_v11 = vpop.f32.mrf.mxu3 }
  0xd2   :  { %v124_v12 = vpop.f32.mrf.mxu0  ;;  %v148_v13 = vpop.f32.mrf.mxu1 }
  0xd3   :  { %v302_v14 = vpack.c.bf16 %v124_v12, %v121_v8  ;;  %v322_v15 = vpack.c.bf16 %v148_v13, %v145_v9 }
  0xd5   :  { %370 = vst [vmem:[#allocation7 + $0x10] sm:$0xff] %v302_v14  }
  0xd6   :  { %374 = vst [vmem:[#allocation7 + $0x30] sm:$0xff] %v322_v15  }
  0xd9   :  { %v172_v16 = vpop.f32.mrf.mxu2  ;;  %v196_v17 = vpop.f32.mrf.mxu3 }
  0xda   :  { %v342_v18 = vpack.c.bf16 %v172_v16, %v169_v10  ;;  %v362_v19 = vpack.c.bf16 %v196_v17, %v193_v11  ;;  %v127_v20 = vpop.f32.mrf.mxu0  ;;  %v151_v21 = vpop.f32.mrf.mxu1 }
  0xdc   :  { %378 = vst [vmem:[#allocation7 + $0x50] sm:$0xff] %v342_v18  }
  0xdd   :  { %382 = vst [vmem:[#allocation7 + $0x70] sm:$0xff] %v362_v19  }
  0xe1   :  { %v175_v22 = vpop.f32.mrf.mxu2  ;;  %v199_v23 = vpop.f32.mrf.mxu3 }
  0xe2   :  { %v130_v24 = vpop.f32.mrf.mxu0  ;;  %v154_v25 = vpop.f32.mrf.mxu1 }
  0xe3   :  { %v307_v26 = vpack.c.bf16 %v130_v24, %v127_v20  ;;  %v327_v27 = vpack.c.bf16 %v154_v25, %v151_v21 }
  0xe5   :  { %371 = vst [vmem:[#allocation7 + $0x18] sm:$0xff] %v307_v26  }
  0xe6   :  { %375 = vst [vmem:[#allocation7 + $0x38] sm:$0xff] %v327_v27  }
  0xe9   :  { %v178_v28 = vpop.f32.mrf.mxu2  ;;  %v202_v29 = vpop.f32.mrf.mxu3 }
  0xea   :  { %v347_v30 = vpack.c.bf16 %v178_v28, %v175_v22  ;;  %v367_v31 = vpack.c.bf16 %v202_v29, %v199_v23 }
  0xec   :  { %379 = vst [vmem:[#allocation7 + $0x58] sm:$0xff] %v347_v30  }
  0xed   :  { %383 = vst [vmem:[#allocation7 + $0x78] sm:$0xff] %v367_v31  }
  0xee   :  { %281 = dma.vmem_to_hbm [thread:$0]  %s274_s1, 2048, %s276_s23, [#allocation4], %s522_s24, %s522_s24, %s523_s25  }
  0xef   :  { %515 = dma.done.wait [#allocation4], 2048  }
  0xf0   :  { %516 = vsyncadd [#allocation4], 4294965248 }
  0xf1   :  { %286 = vsyncpa [#allocation3], 1 }
  0xf2   :  { %287 = vsyncpa [#allocation6], 1 }
  0xf3   :  { %288 = vsyncpa [#allocation4], 1 }

</bundles_post_ra>
